<compile_context>
chip_gen: v6e
topology: v6e:2x2x1
jax: 0.10.0
libtpu: 0.0.40
codegen_flags: <defaults>
</compile_context>

<pallas_src>
import functools

import jax
import jax.numpy as jnp
from jax.experimental import pallas as pl
from jax.experimental.pallas import tpu as pltpu

_MiB = 1024 * 1024


def _rmsnorm_kernel(x_ref, w_ref, o_ref, *, eps: float, exact_type_as: bool):
    # x_ref: (tm, D) block, w_ref: (1, D), o_ref: (tm, D)
    #
    # Pass 1: f32 accumulation of mean(x^2) along the lane axis.  Note x_ref is
    # re-read below (a second, independent `get`) instead of reusing a bound
    # f32 copy, so a full-tile f32 temp does not stay live across the
    # reduction (saves a tile of VMEM and a vst/vld pass).
    xf = x_ref[...].astype(jnp.float32)                   # x.float()
    ms = jnp.mean(xf * xf, axis=-1, keepdims=True)        # mean(x^2, -1)  (XLU)
    inv = jax.lax.rsqrt(ms + eps)                         # rsqrt(.+eps)   (EUP)

    # Pass 2: re-read the input tile for the scale/store.
    x2 = x_ref[...]
    if exact_type_as:
        # Exact PyTorch semantics for sub-f32 x: cast normed back to x.dtype
        # (`.type_as(x)`), then multiply by weight in the promoted dtype.
        normed = (x2.astype(jnp.float32) * inv).astype(x_ref.dtype)
        prod_dtype = jnp.promote_types(x_ref.dtype, w_ref.dtype)
        o_ref[...] = (normed.astype(prod_dtype)
                      * w_ref[...].astype(prod_dtype)).astype(o_ref.dtype)
    else:
        # x is f32 -> `.type_as(x)` is a no-op; fuse and cast once.
        o_ref[...] = (x2.astype(jnp.float32) * inv
                      * w_ref[...].astype(jnp.float32)).astype(o_ref.dtype)


def _tpu_generation_caps():
    """(f32 working-set target per tile, vmem_limit cap) for this TPU gen."""
    kind = ""
    try:
        kind = jax.devices()[0].device_kind.lower()
    except Exception:
        pass
    vmem_phys = None
    try:
        vmem_phys = int(pltpu.get_tpu_info().vmem_capacity_bytes)
    except Exception:
        pass

    if "v7" in kind or "7x" in kind:
        ws, cap = 6 * _MiB, 48 * _MiB      # 64 MiB physical VMEM, 3.2 TB/s HBM
    elif "v6" in kind:
        ws, cap = 4 * _MiB, 96 * _MiB      # 128 MiB physical VMEM
    elif "v5" in kind:
        ws, cap = 3 * _MiB, 96 * _MiB      # 128 MiB physical VMEM, slower HBM
    else:
        ws, cap = 4 * _MiB, 48 * _MiB      # unknown: assume only 64 MiB VMEM

    if vmem_phys:
        cap = min(cap, (vmem_phys * 3) // 4)
    return ws, cap


def _choose_row_tile(rows: int, dim: int, in_itemsize: int,
                     ws_target_bytes: int) -> int:
    """Row tile: multiple of the packed sublane tile for the dtype, sized to
    ~ws_target_bytes of f32 working set, with >=4 (preferably even) grid steps
    when rows allow so both v7x TensorCores get pipelined work."""
    row_align = max(8, 32 // max(1, in_itemsize))   # 8 f32, 16 bf16, 32 int8
    if rows <= row_align:
        return rows                                  # full extent is always legal

    def rnd(t):
        return max(row_align, min(rows, (t // row_align) * row_align))

    tm = rnd(ws_target_bytes // max(1, dim * 4))
    if rows >= 4 * row_align:
        # At least 4 steps (>= 2 per v7x core) so the DMA pipeline overlaps.
        while tm > row_align and pl.cdiv(rows, tm) < 4:
            tm = rnd(tm // 2)
        # Prefer an even step count so the two v7x cores get equal work
        # (bounded search; harmless no-op on single-TC v5e/v6e).
        if pl.cdiv(rows, tm) % 2:
            cand = tm - row_align
            for _ in range(16):
                if cand < row_align:
                    break
                if pl.cdiv(rows, cand) % 2 == 0:
                    tm = cand
                    break
                cand -= row_align
    return tm


def rmsnorm(x: jax.Array, weight: jax.Array, eps: float = 1e-6,
            block_rows: int | None = None, out_dtype=None) -> jax.Array:
    """RMSNorm over the last axis, matching the PyTorch reference forward."""
    orig_shape = x.shape
    dim = orig_shape[-1]
    assert weight.shape == (dim,)

    rows = 1
    for s in orig_shape[:-1]:
        rows *= s
    x2d = x.reshape(rows, dim)
    w2d = weight.reshape(1, dim)

    if out_dtype is None:
        # HBM-bound kernel: default to x.dtype so bf16 activations with f32
        # gamma don't force an f32-promoted output (+50% write traffic).
        # Callers needing exact torch promotion pass
        # out_dtype=jnp.promote_types(x.dtype, weight.dtype).
        out_dtype = x.dtype
    out_dtype = jnp.dtype(out_dtype)

    in_itemsize = jnp.dtype(x.dtype).itemsize
    out_itemsize = out_dtype.itemsize
    w_itemsize = jnp.dtype(weight.dtype).itemsize

    ws_target, vmem_cap = _tpu_generation_caps()
    if block_rows is None:
        tm = _choose_row_tile(rows, dim, in_itemsize, ws_target)
    else:
        row_align = max(8, 32 // max(1, in_itemsize))
        tm = min(block_rows, rows)
        if tm != rows:                       # keep the (8,128) block rule
            tm = max(row_align, (tm // row_align) * row_align)

    grid = pl.cdiv(rows, tm)                 # ragged last block is masked

    # VMEM budget: double-buffered in/out tiles, weight, f32 intermediates
    # headroom; 1.5x margin, capped per generation.
    tile_elems = tm * dim
    need = (2 * tile_elems * in_itemsize
            + 2 * tile_elems * out_itemsize
            + 2 * dim * w_itemsize
            + 3 * tile_elems * 4)
    vmem_limit = int(min(vmem_cap, max(need * 3 // 2, 32 * _MiB)))

    # `.type_as(x)` is a no-op for f32 inputs -> fused epilogue is exact.
    exact_type_as = jnp.dtype(x.dtype) != jnp.dtype(jnp.float32)

    out2d = pl.pallas_call(
        functools.partial(_rmsnorm_kernel, eps=eps, exact_type_as=exact_type_as),
        out_shape=jax.ShapeDtypeStruct((rows, dim), out_dtype),
        grid_spec=pltpu.PrefetchScalarGridSpec(
            num_scalar_prefetch=0,
            grid=(grid,),
            in_specs=[
                pl.BlockSpec((tm, dim), lambda i: (i, 0)),   # x tile
                pl.BlockSpec((1, dim), lambda i: (0, 0)),    # weight (broadcast)
            ],
            out_specs=pl.BlockSpec((tm, dim), lambda i: (i, 0)),
        ),
        compiler_params=pltpu.CompilerParams(
            dimension_semantics=("parallel",),
            vmem_limit_bytes=vmem_limit),
    )(x2d, w2d)

    return out2d.reshape(orig_shape)

# TODO(synk): sweep pipeline_mode=pl.Buffered(3) on the x/out BlockSpecs on v7x
# once profiled (left at the default double-buffering for compile safety).
# TODO(synk): for dim < 128 a lane-dense repack (folding rows into the lane
# axis) would avoid masked stores; not needed for typical llama dims (>=128).


if __name__ == "__main__":
    # Small shapes consistent with the module: (batch, seq, dim)
    batch, seq, dim = 2, 8, 128
    key = jax.random.PRNGKey(0)
    kx, kw = jax.random.split(key)

    x = jax.random.normal(kx, (batch, seq, dim), dtype=jnp.float32)
    # nn.Parameter(torch.ones(dim)) plus a small deterministic perturbation so
    # the elementwise scale is actually exercised.
    weight = jnp.ones((dim,), dtype=jnp.float32) \
        + 0.01 * jax.random.normal(kw, (dim,), dtype=jnp.float32)

    # f32 path (fused epilogue).
    out = jax.block_until_ready(rmsnorm(x, weight, eps=1e-6))
    xf = x.astype(jnp.float32)
    ref = xf * jax.lax.rsqrt(jnp.mean(xf * xf, axis=-1, keepdims=True) + 1e-6)
    ref = ref.astype(x.dtype) * weight
    assert out.shape == x.shape and out.dtype == ref.dtype
    assert jnp.allclose(out, ref, atol=1e-5, rtol=1e-5)

    # bf16 activations + bf16 gamma: exact `.type_as(x)` path, bf16 output.
    xb = x.astype(jnp.bfloat16)
    wb = weight.astype(jnp.bfloat16)
    out_b = jax.block_until_ready(rmsnorm(xb, wb, eps=1e-6))
    xbf = xb.astype(jnp.float32)
    ref_b = xbf * jax.lax.rsqrt(jnp.mean(xbf * xbf, axis=-1, keepdims=True) + 1e-6)
    ref_b = ref_b.astype(jnp.bfloat16).astype(jnp.float32) * wb.astype(jnp.float32)
    assert out_b.dtype == jnp.bfloat16
    assert jnp.allclose(out_b.astype(jnp.float32), ref_b, atol=2e-2, rtol=2e-2)

    # Ragged row count (rows=10, 8-row tile): exercises the cdiv grid with a
    # masked last block.
    xr = jax.random.normal(kx, (2, 5, dim), dtype=jnp.float32)
    out_r = jax.block_until_ready(rmsnorm(xr, weight, eps=1e-6, block_rows=8))
    xrf = xr.astype(jnp.float32)
    ref_r = xrf * jax.lax.rsqrt(jnp.mean(xrf * xrf, axis=-1, keepdims=True) + 1e-6)
    ref_r = ref_r * weight
    assert out_r.shape == xr.shape
    assert jnp.allclose(out_r, ref_r, atol=1e-5, rtol=1e-5)

    print("KERNEL_OK")
</pallas_src>

<mosaic_0001>
module attributes {stable_mosaic.version = 11 : i64} {
  func.func @_rmsnorm_kernel(%arg0: i32, %arg1: memref<16x128xf32, #tpu.memory_space<vmem>>, %arg2: memref<1x128xf32, #tpu.memory_space<vmem>>, %arg3: memref<16x128xf32, #tpu.memory_space<vmem>>) attributes {dimension_semantics = [#tpu.dimension_semantics<parallel>], iteration_bounds = array<i64: 1>, scalar_prefetch = 0 : i64, scratch_operands = 0 : i64, tpu.core_type = #tpu.core_type<tc>, window_params = [{transform_indices = @transform_0, window_bounds = array<i64: 16, 128>}, {pipeline_mode = #tpu.pipeline_mode<synchronous>, transform_indices = @transform_1, window_bounds = array<i64: 1, 128>}, {transform_indices = @transform_2, window_bounds = array<i64: 16, 128>}]} {
    %c0 = arith.constant 0 : index
    %c0_0 = arith.constant 0 : index
    %0 = vector.load %arg1[%c0, %c0_0] : memref<16x128xf32, #tpu.memory_space<vmem>>, vector<16x128xf32>
    %1 = arith.mulf %0, %0 : vector<16x128xf32>
    %cst = arith.constant dense<0.000000e+00> : vector<16xf32>
    %2 = vector.multi_reduction <add>, %1, %cst [1] : vector<16x128xf32> to vector<16xf32>
    %3 = vector.shape_cast %2 : vector<16xf32> to vector<16x1xf32>
    %cst_1 = arith.constant 1.280000e+02 : f32
    %4 = vector.broadcast %cst_1 : f32 to vector<16x1xf32>
    %5 = arith.divf %3, %4 : vector<16x1xf32>
    %cst_2 = arith.constant 9.99999997E-7 : f32
    %6 = vector.broadcast %cst_2 : f32 to vector<16x1xf32>
    %7 = arith.addf %5, %6 : vector<16x1xf32>
    %8 = math.rsqrt %7 : vector<16x1xf32>
    %c0_3 = arith.constant 0 : index
    %c0_4 = arith.constant 0 : index
    %9 = vector.load %arg1[%c0_3, %c0_4] : memref<16x128xf32, #tpu.memory_space<vmem>>, vector<16x128xf32>
    %10 = vector.broadcast %8 : vector<16x1xf32> to vector<16x128xf32>
    %11 = arith.mulf %9, %10 : vector<16x128xf32>
    %c0_5 = arith.constant 0 : index
    %c0_6 = arith.constant 0 : index
    %12 = vector.load %arg2[%c0_5, %c0_6] : memref<1x128xf32, #tpu.memory_space<vmem>>, vector<1x128xf32>
    %13 = vector.broadcast %12 : vector<1x128xf32> to vector<16x128xf32>
    %14 = arith.mulf %11, %13 : vector<16x128xf32>
    %c0_7 = arith.constant 0 : index
    %c0_8 = arith.constant 0 : index
    %15 = vector.load %arg3[%c0_7, %c0_8] : memref<16x128xf32, #tpu.memory_space<vmem>>, vector<16x128xf32>
    tpu.vector_store %arg3[%c0_7, %c0_8], %14 {strides = array<i32>} : memref<16x128xf32, #tpu.memory_space<vmem>>, vector<16x128xf32>,
    return
  }
  func.func @transform_0(%arg0: i32) -> (i32, i32) {
    %c0_i32 = arith.constant 0 : i32
    %c0_i32_0 = arith.constant 0 : i32
    return %arg0, %c0_i32 : i32, i32
  }
  func.func @transform_1(%arg0: i32) -> (i32, i32) {
    %c0_i32 = arith.constant 0 : i32
    %c0_i32_0 = arith.constant 0 : i32
    %c0_i32_1 = arith.constant 0 : i32
    return %c0_i32, %c0_i32_0 : i32, i32
  }
  func.func @transform_2(%arg0: i32) -> (i32, i32) {
    %c0_i32 = arith.constant 0 : i32
    %c0_i32_0 = arith.constant 0 : i32
    return %arg0, %c0_i32 : i32, i32
  }
}

</mosaic_0001>

<bundles_post_ra>
// kernel: tpu_custom_call.1
= control target key start
LH: loop header
LB: loop body
LE: loop exit
PB: predicated region body
PF: predicated region fallthrough
CT: control target
= control target key end

     0   :  { %7 = vsyncpa [#allocation3], 0  ;;  %s158_s0 = inlined_call_operand.hbm [shape: f32[16,128], index: 0, kind: input, shape index: {}]   ;;  %s159_s1 = inlined_call_operand.vmem [shape: f32[1,128], index: 1, kind: input, shape index: {}]   ;;  %s160_s2 = inlined_call_operand.hbm [shape: f32[16,128], index: 2, kind: output, shape index: {}]  }
   0x1   :  { %8 = vsyncpa [#allocation4], 0  ;;  %s124_s9 = smov [#allocation2]  }
   0x2   :  { %s14_s10 = sshll.u32 %s124_s9, 4  ;;  %s15_s10 = int_to_ptr.vmem [resolvable:$true] %s14_s10 }
   0x3   :  { %s88_s11 = scalar_lea.vmem %s15_s10, 256  ;;  %p93_p1 = scmp.lt.s32.totalorder %s15_s10, %s15_s10 }
   0x4   :  { %p89_p0 = scmp.ne.s32.totalorder %s15_s10, %s88_s11  ;;  %p94_p2 = scmp.lt.s32.totalorder %s88_s11, %s88_s11 }
   0x6   :  { %p95_p3 = por %p94_p2, %p93_p1 }
   0x8   :  { %p96_p4 = pnand %p95_p3, %p89_p0 }
   0xa   :  { %99 = shalt.err (!%p96_p4)
}
   0xb   :  { %s125_s12 = smov 128   ;;  %s126_s13 = smov 8  }
   0xc   :  { %20 = dma.hbm_to_vmem [thread:$0]  %s158_s0, 256, %s15_s10, [#allocation3], %s125_s12, %s125_s12, %s126_s13  }
   0xd   :  { %120 = dma.done.wait [#allocation3], 256  }
   0xe   :  { %121 = vsyncadd [#allocation3], 4294967040  ;;  %v26_v0 = vld [vmem:[#allocation2] sm:$0xff]  ;;  %v27_v1 = vld [vmem:[#allocation2 + $0x8] sm:$0xff]  ;;  %s127_s0 = smov [#allocation5]  }
   0xf   :  { %v28_v2 = vmul.f32 %v26_v0, %v26_v0  ;;  %v29_v3 = vmul.f32 %v27_v1, %v27_v1  ;;  %v71_v11 = vld [vmem:[%s159_s1] ss:$0 sm:$0xff]  ;;  %s59_s18 = sshll.u32 %s127_s0, 4  ;;  %s60_s18 = int_to_ptr.vmem [resolvable:$true] %s59_s18 }
  0x10   :  { %s100_s19 = scalar_lea.vmem %s60_s18, 256  ;;  %p105_p6 = scmp.lt.s32.totalorder %s60_s18, %s60_s18 }
  0x11   :  { %30 = vadd.xlane.f32.xlu0 %v28_v2  ;;  %p101_p5 = scmp.ne.s32.totalorder %s60_s18, %s100_s19  ;;  %p106_p7 = scmp.lt.s32.totalorder %s100_s19, %s100_s19 }
  0x13   :  { %p107_p8 = por %p106_p7, %p105_p6 }
  0x15   :  { %32 = vadd.xlane.f32.xlu0 %v29_v3  ;;  %p108_p9 = pnand %p107_p8, %p101_p5 }
  0x9a   :  { %v31_v4 = vpop.xlane.xlu0 %30 }
  0x9b   :  { %v35_v5 = vmul.f32 0.0078125, %v31_v4 }
  0x9d   :  { %v37_v6 = vadd.f32 1e-06, %v35_v5 }
  0x9e   :  { %v33_v7 = vpop.xlane.xlu0 %32 }
  0x9f   :  { %76 = vrsqrt.f32 %v37_v6  ;;  %v36_v8 = vmul.f32 0.0078125, %v33_v7 }
  0xa1   :  { %v38_v9 = vadd.f32 1e-06, %v36_v8 }
  0xa3   :  { %78 = vrsqrt.f32 %v38_v9 }
  0xac   :  { %v77_v10 = vpop.eup %76 }
  0xad   :  { %v41_v12 = vmul.f32 %v77_v10, %v26_v0 }
  0xaf   :  { %v50_v13 = vmul.f32 %v71_v11, %v41_v12 }
  0xb0   :  { %v79_v14 = vpop.eup %78 }
  0xb1   :  { %v42_v15 = vmul.f32 %v79_v14, %v27_v1  ;;  %52 = vst [vmem:[#allocation5] sm:$0xff] %v50_v13 }
  0xb3   :  { %v51_v16 = vmul.f32 %v71_v11, %v42_v15 }
  0xb5   :  { %53 = vst [vmem:[#allocation5 + $0x8] sm:$0xff] %v51_v16 }
  0xb6   :  { %111 = shalt.err (!%p108_p9)
}
  0xb7   :  { %65 = dma.vmem_to_hbm [thread:$0]  %s60_s18, 256, %s160_s2, [#allocation4], %s125_s12, %s125_s12, %s126_s13  }
  0xb8   :  { %122 = dma.done.wait [#allocation4], 256  }
  0xb9   :  { %123 = vsyncadd [#allocation4], 4294967040 }
  0xba   :  { %69 = vsyncpa [#allocation3], 1 }
  0xbb   :  { %70 = vsyncpa [#allocation4], 1 }

</bundles_post_ra>
